<compile_context>
chip_gen: v7x
topology: tpu7x:2x2x1
jax: 0.10.0
libtpu: 0.0.40
codegen_flags: <defaults>
</compile_context>

<pallas_src>
import math
import functools

import jax
import jax.numpy as jnp
from jax.experimental import pallas as pl
from jax.experimental.pallas import tpu as pltpu


# ------------------------------ Fused kernel --------------------------------


def _mha_fused_kernel(xq_ref, xk_ref, xv_ref,
                      wq_ref, bq_ref, wk_ref, bk_ref, wv_ref, bv_ref,
                      wo_ref, bo_ref, o_ref, *, batch, heads, d_k, scale):
    f32 = jnp.float32
    xq = xq_ref[...]                      # (S*B, d_model)
    xk = xk_ref[...]
    xv = xv_ref[...]

    rows = xq.shape[0]                    # S * B
    d_model = o_ref.shape[1]
    out = jnp.zeros((rows, d_model), f32)

    # In the module's quirky flat view, each (s, h) attention group is a run of
    # `batch` consecutive d_k-wide column chunks of one row of the (S*B, H*d_k)
    # projection (valid because heads % batch == 0).  Loop over groups/chunks
    # (small, static, unrolled at trace time).
    n_groups = heads // batch
    for g in range(n_groups):
        base = g * batch
        # Per-chunk projections for this group: (S*B, d_model) @ (d_model, d_k).
        qc = [jnp.dot(xq, wq_ref[base + i], preferred_element_type=f32)
              + bq_ref[base + i] for i in range(batch)]
        kc = [jnp.dot(xk, wk_ref[base + j], preferred_element_type=f32)
              + bk_ref[base + j] for j in range(batch)]
        vc = [jnp.dot(xv, wv_ref[base + j], preferred_element_type=f32)
              + bv_ref[base + j] for j in range(batch)]
        for i in range(batch):
            # Logits against the `batch` keys of this group: row-wise dot
            # products (elementwise multiply + lane reduction; no k.T needed).
            logits = [jnp.sum(qc[i] * kc[j], axis=-1, keepdims=True) * scale
                      for j in range(batch)]                    # B x (rows, 1)
            m = functools.reduce(jnp.maximum, logits)           # stabilizer
            p = [jnp.exp(l - m) for l in logits]
            inv = pl.reciprocal(functools.reduce(jnp.add, p))   # exact 1/denom
            # attn @ V as broadcast multiply-adds.
            ctx = functools.reduce(
                jnp.add, [(p[j] * inv) * vc[j] for j in range(batch)])
            # Chunk (base + i) of the attention output hits rows
            # [(base+i)*d_k, (base+i+1)*d_k) of the output weight.
            out = out + jnp.dot(ctx, wo_ref[base + i],
                                preferred_element_type=f32)

    o_ref[...] = out + bo_ref[...]


def mha_forward(xq, xk, xv, wq_c, bq_c, wk_c, bk_c, wv_c, bv_c, wo_c, bo,
                *, heads, batch, d_k):
    """Fused forward: x* are (S*B, d_model); *_c are the pre-chunked params."""
    rows, _ = xq.shape
    d_model = wo_c.shape[-1]
    kern = functools.partial(_mha_fused_kernel, batch=batch, heads=heads,
                             d_k=d_k, scale=1.0 / math.sqrt(d_k))
    vmem = lambda: pl.BlockSpec(memory_space=pltpu.MemorySpace.VMEM)
    return pl.pallas_call(
        kern,
        out_shape=jax.ShapeDtypeStruct((rows, d_model), jnp.float32),
        in_specs=[vmem() for _ in range(11)],
        out_specs=vmem(),
    )(xq, xk, xv, wq_c, bq_c, wk_c, bk_c, wv_c, bv_c, wo_c, bo)


# ------------------------------ Module wrapper ------------------------------


class MultiHeadAttentionPallas:
    def __init__(self, heads: int, d_model: int, key, bias: bool = True):
        self.heads = heads
        self.d_model = d_model
        self.d_k = d_model  # matches the PyTorch module: self.d_k = d_model
        hd = heads * self.d_k
        ks = jax.random.split(key, 8)

        def init(k, shape, fan_in):
            bound = 1.0 / math.sqrt(fan_in)
            return jax.random.uniform(k, shape, jnp.float32, -bound, bound)

        # Weights stored as (in, out); biases as (1, out) so they are 2-D.
        self.wq = init(ks[0], (d_model, hd), d_model)
        self.bq = init(ks[1], (1, hd), d_model)
        self.wk = init(ks[2], (d_model, hd), d_model)
        self.bk = init(ks[3], (1, hd), d_model)
        self.wv = init(ks[4], (d_model, hd), d_model)
        self.bv = init(ks[5], (1, hd), d_model)
        self.wo = init(ks[6], (hd, d_model), hd)
        self.bo = init(ks[7], (1, d_model), hd)

        # Pre-chunk the projection weights along their output dim (and the
        # output weight along its input dim) so the kernel indexes whole
        # (d_model, d_k) slices with leading-dim loads — no in-kernel lane
        # slicing or reshapes.  Pure one-time parameter re-layout.
        H, D = heads, self.d_k
        self.wq_c = self.wq.reshape(d_model, H, D).transpose(1, 0, 2)  # (H,F,D)
        self.wk_c = self.wk.reshape(d_model, H, D).transpose(1, 0, 2)
        self.wv_c = self.wv.reshape(d_model, H, D).transpose(1, 0, 2)
        self.bq_c = self.bq.reshape(H, 1, D)
        self.bk_c = self.bk.reshape(H, 1, D)
        self.bv_c = self.bv.reshape(H, 1, D)
        self.wo_c = self.wo.reshape(H, D, d_model)

    def __call__(self, *, query, key, value, mask=None):
        # NOTE: the reference forward prepares `mask` but never applies it.
        S, B, F = query.shape
        # TODO(synk): the fused chunk-wise attention assumes heads % batch == 0
        # (holds for this script); the general case needs the gram-matrix
        # formulation with an in-kernel reshape.
        assert self.heads % B == 0, "fused kernel requires heads % batch == 0"
        out2d = mha_forward(
            query.reshape(S * B, F), key.reshape(S * B, F),
            value.reshape(S * B, F),
            self.wq_c, self.bq_c, self.wk_c, self.bk_c, self.wv_c, self.bv_c,
            self.wo_c, self.bo,
            heads=self.heads, batch=B, d_k=self.d_k)
        return out2d.reshape(S, B, self.d_model)


# ------------------------------ Reference (jnp) -----------------------------


def reference_forward(m, query, key, value):
    S, B, F = query.shape

    def prep(x, w, b):
        y = x.reshape(S * B, F) @ w + b                 # (S*B, H*d_k)
        return y.reshape(S, m.heads, B, m.d_k)          # raw view, like torch

    q = prep(query, m.wq, m.bq)
    k = prep(key, m.wk, m.bk)
    v = prep(value, m.wv, m.bv)
    # QK^T / softmax / @V in exact f32 elementwise form (mirrors the kernel),
    # so the comparison is not limited by XLA's default TPU matmul precision.
    logits = (q[:, :, :, None, :] * k[:, :, None, :, :]).sum(-1) / math.sqrt(m.d_k)
    attn = jax.nn.softmax(logits, axis=-1)
    vals = (attn[:, :, :, :, None] * v[:, :, None, :, :]).sum(3)
    x = vals.reshape(S, B, m.heads * m.d_k)             # raw reshape, as torch
    return (x.reshape(S * B, -1) @ m.wo + m.bo).reshape(S, B, m.d_model)


# ----------------------------------- Main -----------------------------------


if __name__ == "__main__":
    heads, d_model = 4, 16
    seq, batch = 8, 2

    root = jax.random.PRNGKey(0)
    k_params, k_q, k_k, k_v = jax.random.split(root, 4)

    mha = MultiHeadAttentionPallas(heads, d_model, k_params, bias=True)

    query = jax.random.normal(k_q, (seq, batch, d_model), jnp.float32)
    key = jax.random.normal(k_k, (seq, batch, d_model), jnp.float32)
    value = jax.random.normal(k_v, (seq, batch, d_model), jnp.float32)

    out = mha(query=query, key=key, value=value)
    out = jax.block_until_ready(out)

    ref = reference_forward(mha, query, key, value)
    assert out.shape == (seq, batch, d_model)
    # Tolerance leaves headroom for XLA's default (possibly reduced-precision)
    # TPU matmuls in the reference; structural errors would be O(0.1-1).
    assert jnp.allclose(out, ref, atol=1e-3, rtol=1e-3), "mismatch vs reference"

    print("KERNEL_OK")
</pallas_src>

<mosaic_0001>
module attributes {stable_mosaic.version = 11 : i64} {
  func.func @_mha_fused_kernel(%arg0: memref<16x16xf32, #tpu.memory_space<vmem>>, %arg1: memref<16x16xf32, #tpu.memory_space<vmem>>, %arg2: memref<16x16xf32, #tpu.memory_space<vmem>>, %arg3: memref<4x16x16xf32, #tpu.memory_space<vmem>>, %arg4: memref<4x1x16xf32, #tpu.memory_space<vmem>>, %arg5: memref<4x16x16xf32, #tpu.memory_space<vmem>>, %arg6: memref<4x1x16xf32, #tpu.memory_space<vmem>>, %arg7: memref<4x16x16xf32, #tpu.memory_space<vmem>>, %arg8: memref<4x1x16xf32, #tpu.memory_space<vmem>>, %arg9: memref<4x16x16xf32, #tpu.memory_space<vmem>>, %arg10: memref<1x16xf32, #tpu.memory_space<vmem>>, %arg11: memref<16x16xf32, #tpu.memory_space<vmem>>) attributes {dimension_semantics = [], scalar_prefetch = 0 : i64, scratch_operands = 0 : i64, tpu.core_type = #tpu.core_type<tc>} {
    %c0 = arith.constant 0 : index
    %c0_0 = arith.constant 0 : index
    %0 = vector.load %arg0[%c0, %c0_0] : memref<16x16xf32, #tpu.memory_space<vmem>>, vector<16x16xf32>
    %c0_1 = arith.constant 0 : index
    %c0_2 = arith.constant 0 : index
    %1 = vector.load %arg1[%c0_1, %c0_2] : memref<16x16xf32, #tpu.memory_space<vmem>>, vector<16x16xf32>
    %c0_3 = arith.constant 0 : index
    %c0_4 = arith.constant 0 : index
    %2 = vector.load %arg2[%c0_3, %c0_4] : memref<16x16xf32, #tpu.memory_space<vmem>>, vector<16x16xf32>
    %cst = arith.constant 0.000000e+00 : f32
    %3 = vector.broadcast %cst : f32 to vector<16x16xf32>
    %c0_5 = arith.constant 0 : index
    %c0_6 = arith.constant 0 : index
    %c0_7 = arith.constant 0 : index
    %4 = vector.load %arg3[%c0_5, %c0_6, %c0_7] : memref<4x16x16xf32, #tpu.memory_space<vmem>>, vector<1x16x16xf32>
    %5 = vector.shape_cast %4 : vector<1x16x16xf32> to vector<16x16xf32>
    %cst_8 = arith.constant dense<0.000000e+00> : vector<16x16xf32>
    %6 = tpu.matmul %0, %5, %cst_8 {dimension_numbers = #tpu.dot_dimension_numbers<[1], [0], [0], [1], [0, 0, 1, 1], [], []>} : vector<16x16xf32>, vector<16x16xf32>, vector<16x16xf32> -> vector<16x16xf32>
    %c0_9 = arith.constant 0 : index
    %c0_10 = arith.constant 0 : index
    %c0_11 = arith.constant 0 : index
    %7 = vector.load %arg4[%c0_9, %c0_10, %c0_11] : memref<4x1x16xf32, #tpu.memory_space<vmem>>, vector<1x1x16xf32>
    %8 = vector.shape_cast %7 : vector<1x1x16xf32> to vector<1x16xf32>
    %9 = vector.broadcast %8 : vector<1x16xf32> to vector<16x16xf32>
    %10 = arith.addf %6, %9 : vector<16x16xf32>
    %c1 = arith.constant 1 : index
    %c0_12 = arith.constant 0 : index
    %c0_13 = arith.constant 0 : index
    %11 = vector.load %arg3[%c1, %c0_12, %c0_13] : memref<4x16x16xf32, #tpu.memory_space<vmem>>, vector<1x16x16xf32>
    %12 = vector.shape_cast %11 : vector<1x16x16xf32> to vector<16x16xf32>
    %cst_14 = arith.constant dense<0.000000e+00> : vector<16x16xf32>
    %13 = tpu.matmul %0, %12, %cst_14 {dimension_numbers = #tpu.dot_dimension_numbers<[1], [0], [0], [1], [0, 0, 1, 1], [], []>} : vector<16x16xf32>, vector<16x16xf32>, vector<16x16xf32> -> vector<16x16xf32>
    %c1_15 = arith.constant 1 : index
    %c0_16 = arith.constant 0 : index
    %c0_17 = arith.constant 0 : index
    %14 = vector.load %arg4[%c1_15, %c0_16, %c0_17] : memref<4x1x16xf32, #tpu.memory_space<vmem>>, vector<1x1x16xf32>
    %15 = vector.shape_cast %14 : vector<1x1x16xf32> to vector<1x16xf32>
    %16 = vector.broadcast %15 : vector<1x16xf32> to vector<16x16xf32>
    %17 = arith.addf %13, %16 : vector<16x16xf32>
    %c0_18 = arith.constant 0 : index
    %c0_19 = arith.constant 0 : index
    %c0_20 = arith.constant 0 : index
    %18 = vector.load %arg5[%c0_18, %c0_19, %c0_20] : memref<4x16x16xf32, #tpu.memory_space<vmem>>, vector<1x16x16xf32>
    %19 = vector.shape_cast %18 : vector<1x16x16xf32> to vector<16x16xf32>
    %cst_21 = arith.constant dense<0.000000e+00> : vector<16x16xf32>
    %20 = tpu.matmul %1, %19, %cst_21 {dimension_numbers = #tpu.dot_dimension_numbers<[1], [0], [0], [1], [0, 0, 1, 1], [], []>} : vector<16x16xf32>, vector<16x16xf32>, vector<16x16xf32> -> vector<16x16xf32>
    %c0_22 = arith.constant 0 : index
    %c0_23 = arith.constant 0 : index
    %c0_24 = arith.constant 0 : index
    %21 = vector.load %arg6[%c0_22, %c0_23, %c0_24] : memref<4x1x16xf32, #tpu.memory_space<vmem>>, vector<1x1x16xf32>
    %22 = vector.shape_cast %21 : vector<1x1x16xf32> to vector<1x16xf32>
    %23 = vector.broadcast %22 : vector<1x16xf32> to vector<16x16xf32>
    %24 = arith.addf %20, %23 : vector<16x16xf32>
    %c1_25 = arith.constant 1 : index
    %c0_26 = arith.constant 0 : index
    %c0_27 = arith.constant 0 : index
    %25 = vector.load %arg5[%c1_25, %c0_26, %c0_27] : memref<4x16x16xf32, #tpu.memory_space<vmem>>, vector<1x16x16xf32>
    %26 = vector.shape_cast %25 : vector<1x16x16xf32> to vector<16x16xf32>
    %cst_28 = arith.constant dense<0.000000e+00> : vector<16x16xf32>
    %27 = tpu.matmul %1, %26, %cst_28 {dimension_numbers = #tpu.dot_dimension_numbers<[1], [0], [0], [1], [0, 0, 1, 1], [], []>} : vector<16x16xf32>, vector<16x16xf32>, vector<16x16xf32> -> vector<16x16xf32>
    %c1_29 = arith.constant 1 : index
    %c0_30 = arith.constant 0 : index
    %c0_31 = arith.constant 0 : index
    %28 = vector.load %arg6[%c1_29, %c0_30, %c0_31] : memref<4x1x16xf32, #tpu.memory_space<vmem>>, vector<1x1x16xf32>
    %29 = vector.shape_cast %28 : vector<1x1x16xf32> to vector<1x16xf32>
    %30 = vector.broadcast %29 : vector<1x16xf32> to vector<16x16xf32>
    %31 = arith.addf %27, %30 : vector<16x16xf32>
    %c0_32 = arith.constant 0 : index
    %c0_33 = arith.constant 0 : index
    %c0_34 = arith.constant 0 : index
    %32 = vector.load %arg7[%c0_32, %c0_33, %c0_34] : memref<4x16x16xf32, #tpu.memory_space<vmem>>, vector<1x16x16xf32>
    %33 = vector.shape_cast %32 : vector<1x16x16xf32> to vector<16x16xf32>
    %cst_35 = arith.constant dense<0.000000e+00> : vector<16x16xf32>
    %34 = tpu.matmul %2, %33, %cst_35 {dimension_numbers = #tpu.dot_dimension_numbers<[1], [0], [0], [1], [0, 0, 1, 1], [], []>} : vector<16x16xf32>, vector<16x16xf32>, vector<16x16xf32> -> vector<16x16xf32>
    %c0_36 = arith.constant 0 : index
    %c0_37 = arith.constant 0 : index
    %c0_38 = arith.constant 0 : index
    %35 = vector.load %arg8[%c0_36, %c0_37, %c0_38] : memref<4x1x16xf32, #tpu.memory_space<vmem>>, vector<1x1x16xf32>
    %36 = vector.shape_cast %35 : vector<1x1x16xf32> to vector<1x16xf32>
    %37 = vector.broadcast %36 : vector<1x16xf32> to vector<16x16xf32>
    %38 = arith.addf %34, %37 : vector<16x16xf32>
    %c1_39 = arith.constant 1 : index
    %c0_40 = arith.constant 0 : index
    %c0_41 = arith.constant 0 : index
    %39 = vector.load %arg7[%c1_39, %c0_40, %c0_41] : memref<4x16x16xf32, #tpu.memory_space<vmem>>, vector<1x16x16xf32>
    %40 = vector.shape_cast %39 : vector<1x16x16xf32> to vector<16x16xf32>
    %cst_42 = arith.constant dense<0.000000e+00> : vector<16x16xf32>
    %41 = tpu.matmul %2, %40, %cst_42 {dimension_numbers = #tpu.dot_dimension_numbers<[1], [0], [0], [1], [0, 0, 1, 1], [], []>} : vector<16x16xf32>, vector<16x16xf32>, vector<16x16xf32> -> vector<16x16xf32>
    %c1_43 = arith.constant 1 : index
    %c0_44 = arith.constant 0 : index
    %c0_45 = arith.constant 0 : index
    %42 = vector.load %arg8[%c1_43, %c0_44, %c0_45] : memref<4x1x16xf32, #tpu.memory_space<vmem>>, vector<1x1x16xf32>
    %43 = vector.shape_cast %42 : vector<1x1x16xf32> to vector<1x16xf32>
    %44 = vector.broadcast %43 : vector<1x16xf32> to vector<16x16xf32>
    %45 = arith.addf %41, %44 : vector<16x16xf32>
    %46 = arith.mulf %10, %24 : vector<16x16xf32>
    %cst_46 = arith.constant dense<0.000000e+00> : vector<16xf32>
    %47 = vector.multi_reduction <add>, %46, %cst_46 [1] : vector<16x16xf32> to vector<16xf32>
    %48 = vector.shape_cast %47 : vector<16xf32> to vector<16x1xf32>
    %cst_47 = arith.constant 2.500000e-01 : f32
    %49 = vector.broadcast %cst_47 : f32 to vector<16x1xf32>
    %50 = arith.mulf %48, %49 : vector<16x1xf32>
    %51 = arith.mulf %10, %31 : vector<16x16xf32>
    %cst_48 = arith.constant dense<0.000000e+00> : vector<16xf32>
    %52 = vector.multi_reduction <add>, %51, %cst_48 [1] : vector<16x16xf32> to vector<16xf32>
    %53 = vector.shape_cast %52 : vector<16xf32> to vector<16x1xf32>
    %cst_49 = arith.constant 2.500000e-01 : f32
    %54 = vector.broadcast %cst_49 : f32 to vector<16x1xf32>
    %55 = arith.mulf %53, %54 : vector<16x1xf32>
    %56 = arith.maximumf %50, %55 : vector<16x1xf32>
    %57 = arith.subf %50, %56 : vector<16x1xf32>
    %58 = math.exp %57 : vector<16x1xf32>
    %59 = arith.subf %55, %56 : vector<16x1xf32>
    %60 = math.exp %59 : vector<16x1xf32>
    %61 = arith.addf %58, %60 : vector<16x1xf32>
    %62 = tpu.reciprocal %61 : vector<16x1xf32> -> vector<16x1xf32>
    %63 = arith.mulf %58, %62 : vector<16x1xf32>
    %64 = vector.broadcast %63 : vector<16x1xf32> to vector<16x16xf32>
    %65 = arith.mulf %64, %38 : vector<16x16xf32>
    %66 = arith.mulf %60, %62 : vector<16x1xf32>
    %67 = vector.broadcast %66 : vector<16x1xf32> to vector<16x16xf32>
    %68 = arith.mulf %67, %45 : vector<16x16xf32>
    %69 = arith.addf %65, %68 : vector<16x16xf32>
    %c0_50 = arith.constant 0 : index
    %c0_51 = arith.constant 0 : index
    %c0_52 = arith.constant 0 : index
    %70 = vector.load %arg9[%c0_50, %c0_51, %c0_52] : memref<4x16x16xf32, #tpu.memory_space<vmem>>, vector<1x16x16xf32>
    %71 = vector.shape_cast %70 : vector<1x16x16xf32> to vector<16x16xf32>
    %cst_53 = arith.constant dense<0.000000e+00> : vector<16x16xf32>
    %72 = tpu.matmul %69, %71, %cst_53 {dimension_numbers = #tpu.dot_dimension_numbers<[1], [0], [0], [1], [0, 0, 1, 1], [], []>} : vector<16x16xf32>, vector<16x16xf32>, vector<16x16xf32> -> vector<16x16xf32>
    %73 = arith.addf %3, %72 : vector<16x16xf32>
    %74 = arith.mulf %17, %24 : vector<16x16xf32>
    %cst_54 = arith.constant dense<0.000000e+00> : vector<16xf32>
    %75 = vector.multi_reduction <add>, %74, %cst_54 [1] : vector<16x16xf32> to vector<16xf32>
    %76 = vector.shape_cast %75 : vector<16xf32> to vector<16x1xf32>
    %cst_55 = arith.constant 2.500000e-01 : f32
    %77 = vector.broadcast %cst_55 : f32 to vector<16x1xf32>
    %78 = arith.mulf %76, %77 : vector<16x1xf32>
    %79 = arith.mulf %17, %31 : vector<16x16xf32>
    %cst_56 = arith.constant dense<0.000000e+00> : vector<16xf32>
    %80 = vector.multi_reduction <add>, %79, %cst_56 [1] : vector<16x16xf32> to vector<16xf32>
    %81 = vector.shape_cast %80 : vector<16xf32> to vector<16x1xf32>
    %cst_57 = arith.constant 2.500000e-01 : f32
    %82 = vector.broadcast %cst_57 : f32 to vector<16x1xf32>
    %83 = arith.mulf %81, %82 : vector<16x1xf32>
    %84 = arith.maximumf %78, %83 : vector<16x1xf32>
    %85 = arith.subf %78, %84 : vector<16x1xf32>
    %86 = math.exp %85 : vector<16x1xf32>
    %87 = arith.subf %83, %84 : vector<16x1xf32>
    %88 = math.exp %87 : vector<16x1xf32>
    %89 = arith.addf %86, %88 : vector<16x1xf32>
    %90 = tpu.reciprocal %89 : vector<16x1xf32> -> vector<16x1xf32>
    %91 = arith.mulf %86, %90 : vector<16x1xf32>
    %92 = vector.broadcast %91 : vector<16x1xf32> to vector<16x16xf32>
    %93 = arith.mulf %92, %38 : vector<16x16xf32>
    %94 = arith.mulf %88, %90 : vector<16x1xf32>
    %95 = vector.broadcast %94 : vector<16x1xf32> to vector<16x16xf32>
    %96 = arith.mulf %95, %45 : vector<16x16xf32>
    %97 = arith.addf %93, %96 : vector<16x16xf32>
    %c1_58 = arith.constant 1 : index
    %c0_59 = arith.constant 0 : index
    %c0_60 = arith.constant 0 : index
    %98 = vector.load %arg9[%c1_58, %c0_59, %c0_60] : memref<4x16x16xf32, #tpu.memory_space<vmem>>, vector<1x16x16xf32>
    %99 = vector.shape_cast %98 : vector<1x16x16xf32> to vector<16x16xf32>
    %cst_61 = arith.constant dense<0.000000e+00> : vector<16x16xf32>
    %100 = tpu.matmul %97, %99, %cst_61 {dimension_numbers = #tpu.dot_dimension_numbers<[1], [0], [0], [1], [0, 0, 1, 1], [], []>} : vector<16x16xf32>, vector<16x16xf32>, vector<16x16xf32> -> vector<16x16xf32>
    %101 = arith.addf %73, %100 : vector<16x16xf32>
    %c2 = arith.constant 2 : index
    %c0_62 = arith.constant 0 : index
    %c0_63 = arith.constant 0 : index
    %102 = vector.load %arg3[%c2, %c0_62, %c0_63] : memref<4x16x16xf32, #tpu.memory_space<vmem>>, vector<1x16x16xf32>
    %103 = vector.shape_cast %102 : vector<1x16x16xf32> to vector<16x16xf32>
    %cst_64 = arith.constant dense<0.000000e+00> : vector<16x16xf32>
    %104 = tpu.matmul %0, %103, %cst_64 {dimension_numbers = #tpu.dot_dimension_numbers<[1], [0], [0], [1], [0, 0, 1, 1], [], []>} : vector<16x16xf32>, vector<16x16xf32>, vector<16x16xf32> -> vector<16x16xf32>
    %c2_65 = arith.constant 2 : index
    %c0_66 = arith.constant 0 : index
    %c0_67 = arith.constant 0 : index
    %105 = vector.load %arg4[%c2_65, %c0_66, %c0_67] : memref<4x1x16xf32, #tpu.memory_space<vmem>>, vector<1x1x16xf32>
    %106 = vector.shape_cast %105 : vector<1x1x16xf32> to vector<1x16xf32>
    %107 = vector.broadcast %106 : vector<1x16xf32> to vector<16x16xf32>
    %108 = arith.addf %104, %107 : vector<16x16xf32>
    %c3 = arith.constant 3 : index
    %c0_68 = arith.constant 0 : index
    %c0_69 = arith.constant 0 : index
    %109 = vector.load %arg3[%c3, %c0_68, %c0_69] : memref<4x16x16xf32, #tpu.memory_space<vmem>>, vector<1x16x16xf32>
    %110 = vector.shape_cast %109 : vector<1x16x16xf32> to vector<16x16xf32>
    %cst_70 = arith.constant dense<0.000000e+00> : vector<16x16xf32>
    %111 = tpu.matmul %0, %110, %cst_70 {dimension_numbers = #tpu.dot_dimension_numbers<[1], [0], [0], [1], [0, 0, 1, 1], [], []>} : vector<16x16xf32>, vector<16x16xf32>, vector<16x16xf32> -> vector<16x16xf32>
    %c3_71 = arith.constant 3 : index
    %c0_72 = arith.constant 0 : index
    %c0_73 = arith.constant 0 : index
    %112 = vector.load %arg4[%c3_71, %c0_72, %c0_73] : memref<4x1x16xf32, #tpu.memory_space<vmem>>, vector<1x1x16xf32>
    %113 = vector.shape_cast %112 : vector<1x1x16xf32> to vector<1x16xf32>
    %114 = vector.broadcast %113 : vector<1x16xf32> to vector<16x16xf32>
    %115 = arith.addf %111, %114 : vector<16x16xf32>
    %c2_74 = arith.constant 2 : index
    %c0_75 = arith.constant 0 : index
    %c0_76 = arith.constant 0 : index
    %116 = vector.load %arg5[%c2_74, %c0_75, %c0_76] : memref<4x16x16xf32, #tpu.memory_space<vmem>>, vector<1x16x16xf32>
    %117 = vector.shape_cast %116 : vector<1x16x16xf32> to vector<16x16xf32>
    %cst_77 = arith.constant dense<0.000000e+00> : vector<16x16xf32>
    %118 = tpu.matmul %1, %117, %cst_77 {dimension_numbers = #tpu.dot_dimension_numbers<[1], [0], [0], [1], [0, 0, 1, 1], [], []>} : vector<16x16xf32>, vector<16x16xf32>, vector<16x16xf32> -> vector<16x16xf32>
    %c2_78 = arith.constant 2 : index
    %c0_79 = arith.constant 0 : index
    %c0_80 = arith.constant 0 : index
    %119 = vector.load %arg6[%c2_78, %c0_79, %c0_80] : memref<4x1x16xf32, #tpu.memory_space<vmem>>, vector<1x1x16xf32>
    %120 = vector.shape_cast %119 : vector<1x1x16xf32> to vector<1x16xf32>
    %121 = vector.broadcast %120 : vector<1x16xf32> to vector<16x16xf32>
    %122 = arith.addf %118, %121 : vector<16x16xf32>
    %c3_81 = arith.constant 3 : index
    %c0_82 = arith.constant 0 : index
    %c0_83 = arith.constant 0 : index
    %123 = vector.load %arg5[%c3_81, %c0_82, %c0_83] : memref<4x16x16xf32, #tpu.memory_space<vmem>>, vector<1x16x16xf32>
    %124 = vector.shape_cast %123 : vector<1x16x16xf32> to vector<16x16xf32>
    %cst_84 = arith.constant dense<0.000000e+00> : vector<16x16xf32>
    %125 = tpu.matmul %1, %124, %cst_84 {dimension_numbers = #tpu.dot_dimension_numbers<[1], [0], [0], [1], [0, 0, 1, 1], [], []>} : vector<16x16xf32>, vector<16x16xf32>, vector<16x16xf32> -> vector<16x16xf32>
    %c3_85 = arith.constant 3 : index
    %c0_86 = arith.constant 0 : index
    %c0_87 = arith.constant 0 : index
    %126 = vector.load %arg6[%c3_85, %c0_86, %c0_87] : memref<4x1x16xf32, #tpu.memory_space<vmem>>, vector<1x1x16xf32>
    %127 = vector.shape_cast %126 : vector<1x1x16xf32> to vector<1x16xf32>
    %128 = vector.broadcast %127 : vector<1x16xf32> to vector<16x16xf32>
    %129 = arith.addf %125, %128 : vector<16x16xf32>
    %c2_88 = arith.constant 2 : index
    %c0_89 = arith.constant 0 : index
    %c0_90 = arith.constant 0 : index
    %130 = vector.load %arg7[%c2_88, %c0_89, %c0_90] : memref<4x16x16xf32, #tpu.memory_space<vmem>>, vector<1x16x16xf32>
    %131 = vector.shape_cast %130 : vector<1x16x16xf32> to vector<16x16xf32>
    %cst_91 = arith.constant dense<0.000000e+00> : vector<16x16xf32>
    %132 = tpu.matmul %2, %131, %cst_91 {dimension_numbers = #tpu.dot_dimension_numbers<[1], [0], [0], [1], [0, 0, 1, 1], [], []>} : vector<16x16xf32>, vector<16x16xf32>, vector<16x16xf32> -> vector<16x16xf32>
    %c2_92 = arith.constant 2 : index
    %c0_93 = arith.constant 0 : index
    %c0_94 = arith.constant 0 : index
    %133 = vector.load %arg8[%c2_92, %c0_93, %c0_94] : memref<4x1x16xf32, #tpu.memory_space<vmem>>, vector<1x1x16xf32>
    %134 = vector.shape_cast %133 : vector<1x1x16xf32> to vector<1x16xf32>
    %135 = vector.broadcast %134 : vector<1x16xf32> to vector<16x16xf32>
    %136 = arith.addf %132, %135 : vector<16x16xf32>
    %c3_95 = arith.constant 3 : index
    %c0_96 = arith.constant 0 : index
    %c0_97 = arith.constant 0 : index
    %137 = vector.load %arg7[%c3_95, %c0_96, %c0_97] : memref<4x16x16xf32, #tpu.memory_space<vmem>>, vector<1x16x16xf32>
    %138 = vector.shape_cast %137 : vector<1x16x16xf32> to vector<16x16xf32>
    %cst_98 = arith.constant dense<0.000000e+00> : vector<16x16xf32>
    %139 = tpu.matmul %2, %138, %cst_98 {dimension_numbers = #tpu.dot_dimension_numbers<[1], [0], [0], [1], [0, 0, 1, 1], [], []>} : vector<16x16xf32>, vector<16x16xf32>, vector<16x16xf32> -> vector<16x16xf32>
    %c3_99 = arith.constant 3 : index
    %c0_100 = arith.constant 0 : index
    %c0_101 = arith.constant 0 : index
    %140 = vector.load %arg8[%c3_99, %c0_100, %c0_101] : memref<4x1x16xf32, #tpu.memory_space<vmem>>, vector<1x1x16xf32>
    %141 = vector.shape_cast %140 : vector<1x1x16xf32> to vector<1x16xf32>
    %142 = vector.broadcast %141 : vector<1x16xf32> to vector<16x16xf32>
    %143 = arith.addf %139, %142 : vector<16x16xf32>
    %144 = arith.mulf %108, %122 : vector<16x16xf32>
    %cst_102 = arith.constant dense<0.000000e+00> : vector<16xf32>
    %145 = vector.multi_reduction <add>, %144, %cst_102 [1] : vector<16x16xf32> to vector<16xf32>
    %146 = vector.shape_cast %145 : vector<16xf32> to vector<16x1xf32>
    %cst_103 = arith.constant 2.500000e-01 : f32
    %147 = vector.broadcast %cst_103 : f32 to vector<16x1xf32>
    %148 = arith.mulf %146, %147 : vector<16x1xf32>
    %149 = arith.mulf %108, %129 : vector<16x16xf32>
    %cst_104 = arith.constant dense<0.000000e+00> : vector<16xf32>
    %150 = vector.multi_reduction <add>, %149, %cst_104 [1] : vector<16x16xf32> to vector<16xf32>
    %151 = vector.shape_cast %150 : vector<16xf32> to vector<16x1xf32>
    %cst_105 = arith.constant 2.500000e-01 : f32
    %152 = vector.broadcast %cst_105 : f32 to vector<16x1xf32>
    %153 = arith.mulf %151, %152 : vector<16x1xf32>
    %154 = arith.maximumf %148, %153 : vector<16x1xf32>
    %155 = arith.subf %148, %154 : vector<16x1xf32>
    %156 = math.exp %155 : vector<16x1xf32>
    %157 = arith.subf %153, %154 : vector<16x1xf32>
    %158 = math.exp %157 : vector<16x1xf32>
    %159 = arith.addf %156, %158 : vector<16x1xf32>
    %160 = tpu.reciprocal %159 : vector<16x1xf32> -> vector<16x1xf32>
    %161 = arith.mulf %156, %160 : vector<16x1xf32>
    %162 = vector.broadcast %161 : vector<16x1xf32> to vector<16x16xf32>
    %163 = arith.mulf %162, %136 : vector<16x16xf32>
    %164 = arith.mulf %158, %160 : vector<16x1xf32>
    %165 = vector.broadcast %164 : vector<16x1xf32> to vector<16x16xf32>
    %166 = arith.mulf %165, %143 : vector<16x16xf32>
    %167 = arith.addf %163, %166 : vector<16x16xf32>
    %c2_106 = arith.constant 2 : index
    %c0_107 = arith.constant 0 : index
    %c0_108 = arith.constant 0 : index
    %168 = vector.load %arg9[%c2_106, %c0_107, %c0_108] : memref<4x16x16xf32, #tpu.memory_space<vmem>>, vector<1x16x16xf32>
    %169 = vector.shape_cast %168 : vector<1x16x16xf32> to vector<16x16xf32>
    %cst_109 = arith.constant dense<0.000000e+00> : vector<16x16xf32>
    %170 = tpu.matmul %167, %169, %cst_109 {dimension_numbers = #tpu.dot_dimension_numbers<[1], [0], [0], [1], [0, 0, 1, 1], [], []>} : vector<16x16xf32>, vector<16x16xf32>, vector<16x16xf32> -> vector<16x16xf32>
    %171 = arith.addf %101, %170 : vector<16x16xf32>
    %172 = arith.mulf %115, %122 : vector<16x16xf32>
    %cst_110 = arith.constant dense<0.000000e+00> : vector<16xf32>
    %173 = vector.multi_reduction <add>, %172, %cst_110 [1] : vector<16x16xf32> to vector<16xf32>
    %174 = vector.shape_cast %173 : vector<16xf32> to vector<16x1xf32>
    %cst_111 = arith.constant 2.500000e-01 : f32
    %175 = vector.broadcast %cst_111 : f32 to vector<16x1xf32>
    %176 = arith.mulf %174, %175 : vector<16x1xf32>
    %177 = arith.mulf %115, %129 : vector<16x16xf32>
    %cst_112 = arith.constant dense<0.000000e+00> : vector<16xf32>
    %178 = vector.multi_reduction <add>, %177, %cst_112 [1] : vector<16x16xf32> to vector<16xf32>
    %179 = vector.shape_cast %178 : vector<16xf32> to vector<16x1xf32>
    %cst_113 = arith.constant 2.500000e-01 : f32
    %180 = vector.broadcast %cst_113 : f32 to vector<16x1xf32>
    %181 = arith.mulf %179, %180 : vector<16x1xf32>
    %182 = arith.maximumf %176, %181 : vector<16x1xf32>
    %183 = arith.subf %176, %182 : vector<16x1xf32>
    %184 = math.exp %183 : vector<16x1xf32>
    %185 = arith.subf %181, %182 : vector<16x1xf32>
    %186 = math.exp %185 : vector<16x1xf32>
    %187 = arith.addf %184, %186 : vector<16x1xf32>
    %188 = tpu.reciprocal %187 : vector<16x1xf32> -> vector<16x1xf32>
    %189 = arith.mulf %184, %188 : vector<16x1xf32>
    %190 = vector.broadcast %189 : vector<16x1xf32> to vector<16x16xf32>
    %191 = arith.mulf %190, %136 : vector<16x16xf32>
    %192 = arith.mulf %186, %188 : vector<16x1xf32>
    %193 = vector.broadcast %192 : vector<16x1xf32> to vector<16x16xf32>
    %194 = arith.mulf %193, %143 : vector<16x16xf32>
    %195 = arith.addf %191, %194 : vector<16x16xf32>
    %c3_114 = arith.constant 3 : index
    %c0_115 = arith.constant 0 : index
    %c0_116 = arith.constant 0 : index
    %196 = vector.load %arg9[%c3_114, %c0_115, %c0_116] : memref<4x16x16xf32, #tpu.memory_space<vmem>>, vector<1x16x16xf32>
    %197 = vector.shape_cast %196 : vector<1x16x16xf32> to vector<16x16xf32>
    %cst_117 = arith.constant dense<0.000000e+00> : vector<16x16xf32>
    %198 = tpu.matmul %195, %197, %cst_117 {dimension_numbers = #tpu.dot_dimension_numbers<[1], [0], [0], [1], [0, 0, 1, 1], [], []>} : vector<16x16xf32>, vector<16x16xf32>, vector<16x16xf32> -> vector<16x16xf32>
    %199 = arith.addf %171, %198 : vector<16x16xf32>
    %c0_118 = arith.constant 0 : index
    %c0_119 = arith.constant 0 : index
    %200 = vector.load %arg10[%c0_118, %c0_119] : memref<1x16xf32, #tpu.memory_space<vmem>>, vector<1x16xf32>
    %201 = vector.broadcast %200 : vector<1x16xf32> to vector<16x16xf32>
    %202 = arith.addf %199, %201 : vector<16x16xf32>
    %c0_120 = arith.constant 0 : index
    %c0_121 = arith.constant 0 : index
    %203 = vector.load %arg11[%c0_120, %c0_121] : memref<16x16xf32, #tpu.memory_space<vmem>>, vector<16x16xf32>
    tpu.vector_store %arg11[%c0_120, %c0_121], %202 {strides = array<i32>} : memref<16x16xf32, #tpu.memory_space<vmem>>, vector<16x16xf32>,
    return
  }
}

</mosaic_0001>

<bundles_post_ra>
// kernel: tpu_custom_call.1
= control target key start
LH: loop header
LB: loop body
LE: loop exit
PB: predicated region body
PF: predicated region fallthrough
CT: control target
= control target key end

     0   :  { %16 = vsyncpa [#allocation3], 0  ;;  %s2659_s0 = inlined_call_operand.hbm [shape: f32[16,16], index: 0, kind: input, shape index: {}]   ;;  %s2660_s1 = inlined_call_operand.hbm [shape: f32[16,16], index: 1, kind: input, shape index: {}]   ;;  %s2661_s2 = inlined_call_operand.hbm [shape: f32[16,16], index: 2, kind: input, shape index: {}]   ;;  %s2662_s3 = inlined_call_operand.hbm [shape: f32[4,16,16], index: 3, kind: input, shape index: {}]   ;;  %s2663_s4 = inlined_call_operand.vmem [shape: f32[4,1,16], index: 4, kind: input, shape index: {}]   ;;  %s2664_s5 = inlined_call_operand.hbm [shape: f32[4,16,16], index: 5, kind: input, shape index: {}]   ;;  %s2665_s6 = inlined_call_operand.vmem [shape: f32[4,1,16], index: 6, kind: input, shape index: {}]   ;;  %s2666_s7 = inlined_call_operand.hbm [shape: f32[4,16,16], index: 7, kind: input, shape index: {}]   ;;  %s2667_s8 = inlined_call_operand.vmem [shape: f32[4,1,16], index: 8, kind: input, shape index: {}]   ;;  %s2668_s9 = inlined_call_operand.hbm [shape: f32[4,16,16], index: 9, kind: input, shape index: {}]   ;;  %s2669_s10 = inlined_call_operand.vmem [shape: f32[1,16], index: 10, kind: input, shape index: {}]   ;;  %s2670_s11 = inlined_call_operand.hbm [shape: f32[16,16], index: 11, kind: output, shape index: {}]  }
   0x1   :  { %17 = vsyncpa [#allocation6], 0 }
   0x2   :  { %18 = vsyncpa [#allocation9], 0 }
   0x3   :  { %19 = vsyncpa [#allocation12], 0 }
   0x4   :  { %20 = vsyncpa [#allocation4], 0  ;;  %s2291_s17 = smov [#allocation5]   ;;  %s2292_s19 = smov [#allocation8]  }
   0x5   :  { %s38_s18 = sshll.u32 %s2291_s17, 4  ;;  %s62_s20 = sshll.u32 %s2292_s19, 4  ;;  %s39_s18 = int_to_ptr.vmem [resolvable:$true] %s38_s18  ;;  %s2361_s20 = int_to_ptr.vmem [resolvable:$true] %s62_s20 }
   0x6   :  { %s2105_s23 = scalar_lea.hbm %s2660_s1, 256 }
   0x7   :  { %p2106_p0 = scmp.ne.s32.totalorder %s2660_s1, %s2105_s23  ;;  %p2109_p1 = scmp.lt.u32.totalorder %s2105_s23, %s2660_s1 }
   0x9   :  { %p2111_p2 = pnand %p2109_p1, %p2106_p0 }
   0xb   :  { %2114 = shalt.err (!%p2111_p2)
}
   0xc   :  { %s2115_s28 = scalar_lea.vmem %s39_s18, 256  ;;  %p2120_p4 = scmp.lt.s32.totalorder %s39_s18, %s39_s18 }
   0xd   :  { %p2116_p3 = scmp.ne.s32.totalorder %s39_s18, %s2115_s28  ;;  %p2121_p5 = scmp.lt.s32.totalorder %s2115_s28, %s2115_s28 }
   0xf   :  { %p2122_p6 = por %p2121_p5, %p2120_p4 }
  0x11   :  { %p2123_p7 = pnand %p2122_p6, %p2116_p3 }
  0x13   :  { %2126 = shalt.err (!%p2123_p7)
}
  0x14   :  { %s2293_s29 = smov 128   ;;  %s2294_s30 = smov 8  }
  0x15   :  { %44 = dma.hbm_to_vmem [thread:$0]  %s2660_s1, 256, %s39_s18, [#allocation6], %s2293_s29, %s2293_s29, %s2294_s30  }
  0x16   :  { %s2127_s16 = scalar_lea.hbm %s2662_s3, 1024 }
  0x17   :  { %p2128_p8 = scmp.ne.s32.totalorder %s2662_s3, %s2127_s16  ;;  %p2131_p9 = scmp.lt.u32.totalorder %s2127_s16, %s2662_s3 }
  0x19   :  { %p2133_p10 = pnand %p2131_p9, %p2128_p8 }
  0x1b   :  { %2136 = shalt.err (!%p2133_p10)
}
  0x1c   :  { %s2137_s23 = scalar_lea.vmem %s2361_s20, 1024  ;;  %p2142_p12 = scmp.lt.s32.totalorder %s2361_s20, %s2361_s20 }
  0x1d   :  { %p2138_p11 = scmp.ne.s32.totalorder %s2361_s20, %s2137_s23  ;;  %p2143_p13 = scmp.lt.s32.totalorder %s2137_s23, %s2137_s23 }
  0x1f   :  { %p2144_p0 = por %p2143_p13, %p2142_p12 }
  0x21   :  { %p2145_p1 = pnand %p2144_p0, %p2138_p11 }
  0x23   :  { %2148 = shalt.err (!%p2145_p1)
}
  0x24   :  { %68 = dma.hbm_to_vmem [thread:$0]  %s2662_s3, 1024, %s2361_s20, [#allocation9], %s2293_s29, %s2293_s29, %s2294_s30  }
  0x25   :  { %s2295_s24 = smov [#allocation11]   ;;  %s2296_s26 = smov [#allocation2]  }
  0x26   :  { %s90_s25 = sshll.u32 %s2295_s24, 4  ;;  %s26_s27 = sshll.u32 %s2296_s26, 4  ;;  %s91_s25 = int_to_ptr.vmem [resolvable:$true] %s90_s25  ;;  %s2398_s27 = int_to_ptr.vmem [resolvable:$true] %s26_s27 }
  0x27   :  { %s2149_s13 = scalar_lea.hbm %s2666_s7, 1024 }
  0x28   :  { %p2150_p2 = scmp.ne.s32.totalorder %s2666_s7, %s2149_s13  ;;  %p2153_p3 = scmp.lt.u32.totalorder %s2149_s13, %s2666_s7 }
  0x2a   :  { %p2155_p4 = pnand %p2153_p3, %p2150_p2 }
  0x2c   :  { %2158 = shalt.err (!%p2155_p4)
}
  0x2d   :  { %s2159_s3 = scalar_lea.vmem %s91_s25, 1024  ;;  %p2164_p6 = scmp.lt.s32.totalorder %s91_s25, %s91_s25 }
  0x2e   :  { %p2160_p5 = scmp.ne.s32.totalorder %s91_s25, %s2159_s3  ;;  %p2165_p7 = scmp.lt.s32.totalorder %s2159_s3, %s2159_s3 }
  0x30   :  { %p2166_p8 = por %p2165_p7, %p2164_p6 }
  0x32   :  { %p2167_p9 = pnand %p2166_p8, %p2160_p5 }
  0x34   :  { %2170 = shalt.err (!%p2167_p9)
}
  0x35   :  { %96 = dma.hbm_to_vmem [thread:$0]  %s2666_s7, 1024, %s91_s25, [#allocation12], %s2293_s29, %s2293_s29, %s2294_s30  }
  0x36   :  { %s2171_s23 = scalar_lea.hbm %s2659_s0, 256 }
  0x37   :  { %p2172_p10 = scmp.ne.s32.totalorder %s2659_s0, %s2171_s23  ;;  %p2175_p11 = scmp.lt.u32.totalorder %s2171_s23, %s2659_s0 }
  0x39   :  { %p2177_p12 = pnand %p2175_p11, %p2172_p10 }
  0x3b   :  { %2180 = shalt.err (!%p2177_p12)
}
  0x3c   :  { %s2181_s28 = scalar_lea.vmem %s2398_s27, 256  ;;  %p2186_p0 = scmp.lt.s32.totalorder %s2398_s27, %s2398_s27 }
  0x3d   :  { %p2182_p13 = scmp.ne.s32.totalorder %s2398_s27, %s2181_s28  ;;  %p2187_p1 = scmp.lt.s32.totalorder %s2181_s28, %s2181_s28 }
  0x3f   :  { %p2188_p2 = por %p2187_p1, %p2186_p0 }
  0x41   :  { %p2189_p3 = pnand %p2188_p2, %p2182_p13 }
  0x43   :  { %2192 = shalt.err (!%p2189_p3)
}
  0x44   :  { %32 = dma.hbm_to_vmem [thread:$0]  %s2659_s0, 256, %s2398_s27, [#allocation3], %s2293_s29, %s2293_s29, %s2294_s30  }
  0x45   :  { %s2297_s12 = smov [#allocation7]   ;;  %s2298_s14 = smov [#allocation10]  }
  0x46   :  { %s50_s13 = sshll.u32 %s2297_s12, 4  ;;  %s76_s15 = sshll.u32 %s2298_s14, 4  ;;  %s51_s13 = int_to_ptr.vmem [resolvable:$true] %s50_s13  ;;  %s2435_s15 = int_to_ptr.vmem [resolvable:$true] %s76_s15 }
  0x47   :  { %s2193_s3 = scalar_lea.hbm %s2661_s2, 256 }
  0x48   :  { %p2194_p4 = scmp.ne.s32.totalorder %s2661_s2, %s2193_s3  ;;  %p2197_p5 = scmp.lt.u32.totalorder %s2193_s3, %s2661_s2 }
  0x4a   :  { %p2199_p6 = pnand %p2197_p5, %p2194_p4 }
  0x4c   :  { %2202 = shalt.err (!%p2199_p6)
}
  0x4d   :  { %s2203_s0 = scalar_lea.vmem %s51_s13, 256  ;;  %p2208_p8 = scmp.lt.s32.totalorder %s51_s13, %s51_s13 }
  0x4e   :  { %p2204_p7 = scmp.ne.s32.totalorder %s51_s13, %s2203_s0  ;;  %p2209_p9 = scmp.lt.s32.totalorder %s2203_s0, %s2203_s0 }
  0x50   :  { %p2210_p10 = por %p2209_p9, %p2208_p8 }
  0x52   :  { %p2211_p11 = pnand %p2210_p10, %p2204_p7 }
  0x54   :  { %2214 = shalt.err (!%p2211_p11)
}
  0x55   :  { %56 = dma.hbm_to_vmem [thread:$0]  %s2661_s2, 256, %s51_s13, [#allocation6], %s2293_s29, %s2293_s29, %s2294_s30  }
  0x56   :  { %s2215_s24 = scalar_lea.hbm %s2664_s5, 1024 }
  0x57   :  { %p2216_p12 = scmp.ne.s32.totalorder %s2664_s5, %s2215_s24  ;;  %p2219_p13 = scmp.lt.u32.totalorder %s2215_s24, %s2664_s5 }
  0x59   :  { %p2221_p0 = pnand %p2219_p13, %p2216_p12 }
  0x5b   :  { %2224 = shalt.err (!%p2221_p0)
}
  0x5c   :  { %s2225_s12 = scalar_lea.vmem %s2435_s15, 1024  ;;  %p2230_p2 = scmp.lt.s32.totalorder %s2435_s15, %s2435_s15 }
  0x5d   :  { %p2226_p1 = scmp.ne.s32.totalorder %s2435_s15, %s2225_s12  ;;  %p2231_p3 = scmp.lt.s32.totalorder %s2225_s12, %s2225_s12 }
  0x5f   :  { %p2232_p4 = por %p2231_p3, %p2230_p2 }
  0x61   :  { %p2233_p5 = pnand %p2232_p4, %p2226_p1 }
  0x63   :  { %2236 = shalt.err (!%p2233_p5)
}
  0x64   :  { %82 = dma.hbm_to_vmem [thread:$0]  %s2664_s5, 1024, %s2435_s15, [#allocation9], %s2293_s29, %s2293_s29, %s2294_s30  }
  0x65   :  { %s2299_s14 = smov [#allocation13]   ;;  %s2237_s20 = scalar_lea.hbm %s2668_s9, 1024 }
  0x66   :  { %s104_s16 = sshll.u32 %s2299_s14, 4  ;;  %p2238_p6 = scmp.ne.s32.totalorder %s2668_s9, %s2237_s20  ;;  %s105_s16 = int_to_ptr.vmem [resolvable:$true] %s104_s16 }
  0x67   :  { %p2241_p7 = scmp.lt.u32.totalorder %s2237_s20, %s2668_s9 }
  0x69   :  { %p2243_p8 = pnand %p2241_p7, %p2238_p6 }
  0x6b   :  { %2246 = shalt.err (!%p2243_p8)
}
  0x6c   :  { %s2247_s27 = scalar_lea.vmem %s105_s16, 1024  ;;  %p2252_p10 = scmp.lt.s32.totalorder %s105_s16, %s105_s16 }
  0x6d   :  { %p2248_p9 = scmp.ne.s32.totalorder %s105_s16, %s2247_s27  ;;  %p2253_p11 = scmp.lt.s32.totalorder %s2247_s27, %s2247_s27 }
  0x6f   :  { %p2254_p12 = por %p2253_p11, %p2252_p10 }
  0x71   :  { %p2255_p13 = pnand %p2254_p12, %p2248_p9 }
  0x73   :  { %2258 = shalt.err (!%p2255_p13)
}
  0x74   :  { %110 = dma.hbm_to_vmem [thread:$0]  %s2668_s9, 1024, %s105_s16, [#allocation12], %s2293_s29, %s2293_s29, %s2294_s30  }
  0x75   :  { %2281 = dma.done.wait [#allocation3], 256  }
  0x76   :  { %2282 = vsyncadd [#allocation3], 4294967040 }
  0x77   :  { %2283 = dma.done.wait [#allocation6], 512  }
  0x78   :  { %2284 = vsyncadd [#allocation6], 4294966784 }
  0x79   :  { %2285 = dma.done.wait [#allocation9], 2048  }
  0x7a   :  { %2286 = vsyncadd [#allocation9], 4294965248 }
  0x7b   :  { %2287 = dma.done.wait [#allocation12], 2048  }
  0x7c   :  { %2288 = vsyncadd [#allocation12], 4294965248  ;;  %vm149_vm0 = vcmask 130048   ;;  %v140_v0 = vld [vmem:[#allocation8] sm:$0xff]  ;;  %v141_v1 = vld [vmem:[#allocation8 + $0x8] sm:$0xff]  ;;  %s2300_s15 = smov [#allocation14]  }
  0x7d   :  { %v317_v2 = vld [vmem:[#allocation10] sm:$0xff]  ;;  %v1977_v3 = vpack.c.bf16 %v141_v1, %v140_v0  ;;  %v318_v4 = vld [vmem:[#allocation10 + $0x8] sm:$0xff]  ;;  %v2487_v5 = vld [vmem:[#allocation2] sm:$0xff]  ;;  %s1732_s9 = sshll.u32 %s2300_s15, 4  ;;  %s1733_s9 = int_to_ptr.vmem [resolvable:$true] %s1732_s9 }
  0x7e   :  { %v2489_v6 = vld [vmem:[#allocation5] sm:$0xff]  ;;  %v1985_v7 = vpack.c.bf16 %v318_v4, %v317_v2  ;;  %1869 = vmatprep.mubr.msk.f32.mxu1 %vm149_vm0, %v2487_v5  ;;  %v232_v8 = vld [vmem:[#allocation8 + $0x10] sm:$0xff]  ;;  %v233_v9 = vld [vmem:[#allocation8 + $0x18] sm:$0xff]  ;;  %s2259_s23 = scalar_lea.vmem %s1733_s9, 256  ;;  %p2264_p1 = scmp.lt.s32.totalorder %s1733_s9, %s1733_s9 }
  0x7f   :  { %1883 = vmatprep.mubr.msk.f32.mxu0 %vm149_vm0, %v2489_v6  ;;  %1978 = vmatprep.subr.bf16.mxu1 %v1977_v3  ;;  %v1981_v10 = vpack.c.bf16 %v233_v9, %v232_v8  ;;  %v408_v11 = vld [vmem:[#allocation10 + $0x10] sm:$0xff]  ;;  %v409_v12 = vld [vmem:[#allocation10 + $0x18] sm:$0xff]  ;;  %v493_v14 = vld [vmem:[#allocation11] sm:$0xff]  ;;  %p2260_p0 = scmp.ne.s32.totalorder %s1733_s9, %s2259_s23  ;;  %p2265_p2 = scmp.lt.s32.totalorder %s2259_s23, %s2259_s23 }
  0x80   :  { %1986 = vmatprep.subr.bf16.mxu0 %v1985_v7  ;;  %1980 = vmatpush3.bf16.msra.mxu1 %v1977_v3  ;;  %v2495_v13 = vld [vmem:[#allocation2 + $0x8] sm:$0xff]  ;;  %v494_v15 = vld [vmem:[#allocation11 + $0x8] sm:$0xff]  ;;  %v1989_v17 = vpack.c.bf16 %v409_v12, %v408_v11  ;;  %v584_v19 = vld [vmem:[#allocation11 + $0x10] sm:$0xff] }
  0x81   :  { %1988 = vmatpush3.bf16.msra.mxu0 %v1985_v7  ;;  %1982 = vmatprep.subr.bf16.mxu1 %v1981_v10  ;;  %v2497_v16 = vld [vmem:[#allocation5 + $0x8] sm:$0xff]  ;;  %v1993_v18 = vpack.c.bf16 %v494_v15, %v493_v14  ;;  %v585_v20 = vld [vmem:[#allocation11 + $0x18] sm:$0xff]  ;;  %v2501_v21 = vld [vmem:[#allocation7] sm:$0xff]  ;;  %p2266_p3 = por %p2265_p2, %p2264_p1 }
  0x82   :  { %v1997_v22 = vpack.c.bf16 %v585_v20, %v584_v19  ;;  %v2509_v23 = vld [vmem:[#allocation7 + $0x8] sm:$0xff]  ;;  %v1747_v24 = vld [vmem:[%s2663_s4] ss:$0 sm:$0xff]  ;;  %v1751_v33 = vld [vmem:[%s2663_s4 + $0x1] ss:$0 sm:$0xff] }
  0x83   :  { %1870 = vmatmul.mubr.msk.f32.vlgmr.msra.gmra.mrb[0].mxu1 %vm149_vm0, %v2495_v13  ;;  %1994 = vmatprep.subr.bf16.mxu0 %v1993_v18  ;;  %v1754_v25 = vld [vmem:[%s2665_s6] ss:$0 sm:$0xff]  ;;  %v1758_v41 = vld [vmem:[%s2665_s6 + $0x1] ss:$0 sm:$0xff]  ;;  %v933_v60 = vld [vmem:[#allocation8 + $0x20] sm:$0xff]  ;;  %p2267_p4 = pnand %p2266_p3, %p2260_p0 }
  0x84   :  { %1884 = vmatmul.mubr.msk.f32.vlgmr.msra.gmra.mrb[0].mxu0 %vm149_vm0, %v2497_v16  ;;  %1984 = vmatpush3.bf16.msra.mxu1 %v1981_v10  ;;  %v934_v61 = vld [vmem:[#allocation8 + $0x28] sm:$0xff]  ;;  %v1019_v63 = vld [vmem:[#allocation8 + $0x30] sm:$0xff]  ;;  %v1020_v0 = vld [vmem:[#allocation8 + $0x38] sm:$0xff] }
  0x85   :  { %1876 = vmatprep.mubr.msk.f32.mxu1 %vm149_vm0, %v2487_v5  ;;  %1990 = vmatprep.subr.bf16.mxu1 %v1989_v17  ;;  %v2009_v62 = vpack.c.bf16 %v934_v61, %v933_v60  ;;  %v2013_v1 = vpack.c.bf16 %v1020_v0, %v1019_v63  ;;  %v1191_v2 = vld [vmem:[#allocation10 + $0x30] sm:$0xff]  ;;  %v1192_v3 = vld [vmem:[#allocation10 + $0x38] sm:$0xff]  ;;  %v717_v14 = vld [vmem:[#allocation13] sm:$0xff] }
  0x86   :  { %1996 = vmatpush3.bf16.msra.mxu0 %v1993_v18  ;;  %1897 = vmatprep.mubr.msk.f32.mxu0 %vm149_vm0, %v2501_v21  ;;  %v2021_v7 = vpack.c.bf16 %v1192_v3, %v1191_v2  ;;  %v769_v11 = vld [vmem:[#allocation13 + $0x18] sm:$0xff]  ;;  %v718_v15 = vld [vmem:[#allocation13 + $0x8] sm:$0xff] }
  0x87   :  { %1877 = vmatmul.mubr.msk.f32.vlgmr.msra.gmra.mrb[2].mxu1 %vm149_vm0, %v2495_v13  ;;  %v1364_v18 = vld [vmem:[#allocation11 + $0x38] sm:$0xff] }
  0x88   :  { %1992 = vmatpush3.bf16.msra.mxu1 %v1989_v17  ;;  %1890 = vmatprep.mubr.msk.f32.mxu1 %vm149_vm0, %v2489_v6  ;;  %v2565_v17 = vpack.c.bf16 %v718_v15, %v717_v14 }
  0x89   :  { %1998 = vmatprep.subr.bf16.mxu1 %v1997_v22  ;;  %1898 = vmatmul.mubr.msk.f32.vlgmr.msra.gmra.mrb[2].mxu0 %vm149_vm0, %v2509_v23 }
  0x8b   :  { %1891 = vmatmul.mubr.msk.f32.vlgmr.msra.gmra.mrb[4].mxu1 %vm149_vm0, %v2497_v16 }
  0x8c   :  { %2000 = vmatpush3.bf16.msra.mxu1 %v1997_v22  ;;  %1904 = vmatprep.mubr.msk.f32.mxu1 %vm149_vm0, %v2501_v21 }
  0x8d   :  { %2010 = vmatprep.subr.bf16.mxu1 %v2009_v62 }
  0x8f   :  { %1905 = vmatmul.mubr.msk.f32.vlgmr.msra.gmra.mrb[6].mxu1 %vm149_vm0, %v2509_v23 }
  0x90   :  { %1925 = vmatprep.mubr.msk.f32.mxu1 %vm149_vm0, %v2487_v5  ;;  %2012 = vmatpush3.bf16.msra.mxu1 %v2009_v62 }
  0x91   :  { %2014 = vmatprep.subr.bf16.mxu1 %v2013_v1 }
  0x93   :  { %1926 = vmatmul.mubr.msk.f32.vlgmr.msra.gmra.mrb[8].mxu1 %vm149_vm0, %v2495_v13 }
  0x94   :  { %2016 = vmatpush3.bf16.msra.mxu1 %v2013_v1  ;;  %1932 = vmatprep.mubr.msk.f32.mxu1 %vm149_vm0, %v2487_v5  ;;  %v768_v5 = vld [vmem:[#allocation13 + $0x10] sm:$0xff] }
  0x95   :  { %2022 = vmatprep.subr.bf16.mxu1 %v2021_v7  ;;  %v2001_v12 = vpack.c.bf16 %v769_v11, %v768_v5  ;;  %v1761_v5 = vld [vmem:[%s2667_s8] ss:$0 sm:$0xff]  ;;  %v1765_v11 = vld [vmem:[%s2667_s8 + $0x1] ss:$0 sm:$0xff] }
  0x97   :  { %1933 = vmatmul.mubr.msk.f32.vlgmr.msra.gmra.mrb[10].mxu1 %vm149_vm0, %v2495_v13  ;;  %2002 = vmatprep.subr.bf16.mxu0 %v2001_v12  ;;  %v1363_v13 = vld [vmem:[#allocation11 + $0x30] sm:$0xff] }
  0x98   :  { %2024 = vmatpush3.bf16.msra.mxu1 %v2021_v7  ;;  %1946 = vmatprep.mubr.msk.f32.mxu1 %vm149_vm0, %v2489_v6  ;;  %v2029_v19 = vpack.c.bf16 %v1364_v18, %v1363_v13 }
  0x99   :  { %2004 = vmatpush3.bf16.msra.mxu0 %v2001_v12 }
  0x9a   :  { %2006 = vmatprep.subr.bf16.mxu0 %v2565_v17  ;;  %2030 = vmatprep.subr.bf16.mxu1 %v2029_v19 }
  0x9b   :  { %1947 = vmatmul.mubr.msk.f32.vlgmr.msra.gmra.mrb[12].mxu1 %vm149_vm0, %v2497_v16 }
  0x9c   :  { %1960 = vmatprep.mubr.msk.f32.mxu1 %vm149_vm0, %v2501_v21  ;;  %2032 = vmatpush3.bf16.msra.mxu1 %v2029_v19 }
  0x9f   :  { %1961 = vmatmul.mubr.msk.f32.vlgmr.msra.gmra.mrb[14].mxu1 %vm149_vm0, %v2509_v23 }
 0x156   :  { %v1871_v26 = vpop.f32.mrb[0].mxu1 }
 0x157   :  { %v228_v27 = vadd.f32 %v1871_v26, %v1747_v24  ;;  %v1885_v28 = vpop.f32.mrb[0].mxu0  ;;  %v222_v29 = vpop.f32.mrb[1].mxu1 }
 0x158   :  { %v404_v30 = vadd.f32 %v1885_v28, %v1754_v25  ;;  %v223_v31 = vadd.f32 %v1747_v24, %v222_v29  ;;  %v398_v32 = vpop.f32.mrb[1].mxu0 }
 0x159   :  { %v399_v34 = vadd.f32 %v1754_v25, %v398_v32 }
 0x15a   :  { %v1878_v35 = vpop.f32.mrb[2].mxu1  ;;  %v670_v36 = vmul.f32 %v404_v30, %v228_v27 }
 0x15b   :  { %v314_v37 = vadd.f32 %v1878_v35, %v1751_v33  ;;  %v308_v38 = vpop.f32.mrb[3].mxu1  ;;  %v669_v39 = vmul.f32 %v399_v34, %v223_v31 }
 0x15c   :  { %v309_v40 = vadd.f32 %v1751_v33, %v308_v38  ;;  %v674_v59 = vsel %vm149_vm0, %v670_v36, 0.0  ;;  %v2549_v4 = vpop.f32.mrb[2].mxu0 }
 0x15d   :  { %v720_v42 = vmul.f32 %v404_v30, %v314_v37  ;;  %v671_v57 = vsel %vm149_vm0, %v669_v39, 0.0  ;;  %v2553_v9 = vpop.f32.mrb[3].mxu0  ;;  %v580_v14 = vadd.f32 %v2549_v4, %v1761_v5  ;;  %v1106_v4 = vld [vmem:[#allocation10 + $0x28] sm:$0xff] }
 0x15e   :  { %v1892_v43 = vpop.f32.mrb[4].mxu1  ;;  %v719_v44 = vmul.f32 %v399_v34, %v309_v40 }
 0x15f   :  { %v490_v45 = vadd.f32 %v1892_v43, %v1758_v41  ;;  %v484_v46 = vpop.f32.mrb[5].mxu1  ;;  %v724_v47 = vsel %vm149_vm0, %v720_v42, 0.0 }
 0x160   :  { %v485_v48 = vadd.f32 %v1758_v41, %v484_v46  ;;  %725 = vadd.xlane.f32.xlu1 %v724_v47  ;;  %v721_v49 = vsel %vm149_vm0, %v719_v44, 0.0 }
 0x161   :  { %722 = vadd.xlane.f32.xlu0 %v721_v49  ;;  %v730_v50 = vmul.f32 %v490_v45, %v314_v37  ;;  %v680_v51 = vmul.f32 %v490_v45, %v228_v27 }
 0x162   :  { %v729_v52 = vmul.f32 %v485_v48, %v309_v40  ;;  %v679_v53 = vmul.f32 %v485_v48, %v223_v31  ;;  %v2551_v8 = vpop.f32.mrb[6].mxu1 }
 0x163   :  { %v734_v54 = vsel %vm149_vm0, %v730_v50, 0.0  ;;  %v684_v58 = vsel %vm149_vm0, %v680_v51, 0.0  ;;  %v2555_v10 = vpop.f32.mrb[7].mxu1  ;;  %v666_v15 = vadd.f32 %v2551_v8, %v1765_v11 }
 0x164   :  { %735 = vadd.xlane.f32.xlu1 %v734_v54  ;;  %v731_v55 = vsel %vm149_vm0, %v729_v52, 0.0  ;;  %v681_v56 = vsel %vm149_vm0, %v679_v53, 0.0 }
 0x165   :  { %732 = vadd.xlane.f32.xlu0 %v731_v55 }
 0x168   :  { %682 = vadd.xlane.f32.xlu1 %v681_v56 }
 0x169   :  { %672 = vadd.xlane.f32.xlu0 %v671_v57 }
 0x16c   :  { %685 = vadd.xlane.f32.xlu1 %v684_v58 }
 0x16d   :  { %675 = vadd.xlane.f32.xlu0 %v674_v59 }
 0x1ed   :  { %v726_v20 = vpop.xlane.xlu1 %725 }
 0x1ee   :  { %v723_v22 = vpop.xlane.xlu0 %722  ;;  %v728_v25 = vmul.f32 0.25, %v726_v20  ;;  %v575_v20 = vadd.f32 %v1761_v5, %v2553_v9 }
 0x1ef   :  { %v727_v28 = vmul.f32 0.25, %v723_v22  ;;  %v661_v22 = vadd.f32 %v1765_v11, %v2555_v10 }
 0x1f1   :  { %v736_v24 = vpop.xlane.xlu1 %735 }
 0x1f2   :  { %v738_v26 = vmul.f32 0.25, %v736_v24  ;;  %v733_v27 = vpop.xlane.xlu0 %732 }
 0x1f3   :  { %v737_v29 = vmul.f32 0.25, %v733_v27 }
 0x1f4   :  { %v740_v30 = vmax.f32 %v728_v25, %v738_v26 }
 0x1f5   :  { %v739_v31 = vmax.f32 %v727_v28, %v737_v29  ;;  %v683_v32 = vpop.xlane.xlu1 %682 }
 0x1f6   :  { %v742_v33 = vsub.f32 %v728_v25, %v740_v30  ;;  %v748_v34 = vsub.f32 %v738_v26, %v740_v30  ;;  %v687_v35 = vmul.f32 0.25, %v683_v32  ;;  %v673_v36 = vpop.xlane.xlu0 %672 }
 0x1f7   :  { %v741_v37 = vsub.f32 %v727_v28, %v739_v31  ;;  %v747_v38 = vsub.f32 %v737_v29, %v739_v31  ;;  %v677_v39 = vmul.f32 0.25, %v673_v36 }
 0x1f8   :  { %v745_v40 = vmul.f32 1.442695, %v742_v33  ;;  %v751_v41 = vmul.f32 1.442695, %v748_v34  ;;  %v1105_v33 = vld [vmem:[#allocation10 + $0x20] sm:$0xff] }
 0x1f9   :  { %v743_v42 = vmul.f32 1.442695, %v741_v37  ;;  %v749_v43 = vmul.f32 1.442695, %v747_v38  ;;  %v689_v44 = vmax.f32 %v677_v39, %v687_v35  ;;  %v686_v45 = vpop.xlane.xlu1 %685  ;;  %v2017_v38 = vpack.c.bf16 %v1106_v4, %v1105_v33 }
 0x1fa   :  { %2057 = vpow2.f32 %v745_v40  ;;  %v688_v46 = vmul.f32 0.25, %v686_v45  ;;  %v676_v47 = vpop.xlane.xlu0 %675 }
 0x1fb   :  { %2059 = vpow2.f32 %v751_v41  ;;  %v691_v48 = vsub.f32 %v677_v39, %v689_v44  ;;  %v697_v49 = vsub.f32 %v687_v35, %v689_v44  ;;  %v678_v50 = vmul.f32 0.25, %v676_v47  ;;  %v1278_v44 = vld [vmem:[#allocation11 + $0x28] sm:$0xff] }
 0x1fc   :  { %2061 = vpow2.f32 %v743_v42 }
 0x1fd   :  { %2063 = vpow2.f32 %v749_v43  ;;  %v693_v51 = vmul.f32 1.442695, %v691_v48  ;;  %v699_v52 = vmul.f32 1.442695, %v697_v49  ;;  %v690_v53 = vmax.f32 %v678_v50, %v688_v46  ;;  %v1277_v43 = vld [vmem:[#allocation11 + $0x20] sm:$0xff] }
 0x1fe   :  { %v1773_v49 = vld [vmem:[%s2663_s4 + $0x2] ss:$0 sm:$0xff] }
 0x1ff   :  { %2065 = vpow2.f32 %v693_v51  ;;  %v692_v54 = vsub.f32 %v678_v50, %v690_v53  ;;  %v698_v55 = vsub.f32 %v688_v46, %v690_v53  ;;  %v2025_v46 = vpack.c.bf16 %v1278_v44, %v1277_v43 }
 0x200   :  { %2067 = vpow2.f32 %v699_v52 }
 0x201   :  { %v695_v56 = vmul.f32 1.442695, %v692_v54  ;;  %v701_v57 = vmul.f32 1.442695, %v698_v55 }
 0x203   :  { %2069 = vpow2.f32 %v695_v56 }
 0x204   :  { %v2058_v58 = vpop.eup %2057  ;;  %2071 = vpow2.f32 %v701_v57 }
 0x205   :  { %v2060_v59 = vpop.eup %2059 }
 0x206   :  { %v2062_v60 = vpop.eup %2061  ;;  %v754_v61 = vadd.f32 %v2060_v59, %v2058_v58 }
 0x207   :  { %v2064_v62 = vpop.eup %2063 }
 0x208   :  { %2073 = vrcp.f32 %v754_v61  ;;  %v753_v63 = vadd.f32 %v2064_v62, %v2062_v60 }
 0x209   :  { %v2066_v0 = vpop.eup %2065 }
 0x20a   :  { %v2068_v1 = vpop.eup %2067  ;;  %2075 = vrcp.f32 %v753_v63 }
 0x20b   :  { %v703_v2 = vadd.f32 %v2068_v1, %v2066_v0 }
 0x20d   :  { %v2070_v3 = vpop.eup %2069  ;;  %2077 = vrcp.f32 %v703_v2 }
 0x20e   :  { %v2072_v7 = vpop.eup %2071 }
 0x20f   :  { %v704_v12 = vadd.f32 %v2072_v7, %v2070_v3 }
 0x211   :  { %2079 = vrcp.f32 %v704_v12 }
 0x212   :  { %v2074_v13 = vpop.eup %2073 }
 0x213   :  { %v758_v18 = vmul.f32 %v2074_v13, %v2058_v58  ;;  %v762_v19 = vmul.f32 %v2074_v13, %v2060_v59 }
 0x214   :  { %v2076_v24 = vpop.eup %2075 }
 0x215   :  { %v760_v25 = vmul.f32 %v758_v18, %v580_v14  ;;  %v764_v26 = vmul.f32 %v762_v19, %v666_v15  ;;  %v757_v27 = vmul.f32 %v2076_v24, %v2062_v60  ;;  %v761_v28 = vmul.f32 %v2076_v24, %v2064_v62 }
 0x217   :  { %v2078_v29 = vpop.eup %2077  ;;  %v766_v30 = vadd.f32 %v764_v26, %v760_v25  ;;  %v759_v31 = vmul.f32 %v757_v27, %v575_v20  ;;  %v763_v32 = vmul.f32 %v761_v28, %v661_v22  ;;  %v1497_v27 = vld [vmem:[#allocation13 + $0x20] sm:$0xff]  ;;  %v1498_v28 = vld [vmem:[#allocation13 + $0x28] sm:$0xff] }
 0x218   :  { %v707_v34 = vmul.f32 %v2078_v29, %v2066_v0  ;;  %v711_v8 = vmul.f32 %v2078_v29, %v2068_v1  ;;  %v1781_v1 = vld [vmem:[%s2665_s6 + $0x2] ss:$0 sm:$0xff]  ;;  %v2033_v29 = vpack.c.bf16 %v1498_v28, %v1497_v27 }
 0x219   :  { %v765_v35 = vadd.f32 %v763_v32, %v759_v31  ;;  %v1632_v31 = vld [vmem:[#allocation13 + $0x38] sm:$0xff] }
 0x21a   :  { %v709_v36 = vmul.f32 %v707_v34, %v575_v20  ;;  %v713_v37 = vmul.f32 %v711_v8, %v661_v22 }
 0x21b   :  { %v2080_v9 = vpop.eup %2079  ;;  %1911 = vmatprep.mubr.msk.f32.mxu0 %vm149_vm0, %v765_v35 }
 0x21c   :  { %v708_v10 = vmul.f32 %v2080_v9, %v2070_v3  ;;  %v712_v39 = vmul.f32 %v2080_v9, %v2072_v7  ;;  %v715_v40 = vadd.f32 %v713_v37, %v709_v36  ;;  %1912 = vmatmul.mubr.msk.f32.vlgmr.msra.gmra.mrb[4].mxu0 %vm149_vm0, %v766_v30  ;;  %v1631_v30 = vld [vmem:[#allocation13 + $0x30] sm:$0xff] }
 0x21d   :  { %2008 = vmatpush3.bf16.msra.mxu0 %v2565_v17  ;;  %v1927_v17 = vpop.f32.mrb[8].mxu1  ;;  %v2621_v32 = vpack.c.bf16 %v1632_v31, %v1631_v30 }
 0x21e   :  { %v710_v41 = vmul.f32 %v708_v10, %v580_v14  ;;  %v714_v42 = vmul.f32 %v712_v39, %v666_v15  ;;  %1918 = vmatprep.mubr.msk.f32.mxu0 %vm149_vm0, %v715_v40  ;;  %2018 = vmatprep.subr.bf16.mxu0 %v2017_v38  ;;  %v1009_v47 = vpop.f32.mrb[9].mxu1 }
 0x21f   :  { %v1934_v48 = vpop.f32.mrb[10].mxu1  ;;  %v1010_v51 = vadd.f32 %v1773_v49, %v1009_v47 }
 0x220   :  { %v716_v45 = vadd.f32 %v714_v42, %v710_v41  ;;  %v1095_v50 = vpop.f32.mrb[11].mxu1 }
 0x221   :  { %v1948_v52 = vpop.f32.mrb[12].mxu1 }
 0x222   :  { %v1267_v53 = vpop.f32.mrb[13].mxu1 }
 0x223   :  { %v2615_v24 = vpop.f32.mrb[14].mxu1 }
 0x224   :  { %1919 = vmatmul.mubr.msk.f32.vlgmr.msra.gmra.mrb[4].mxu0 %vm149_vm0, %v716_v45  ;;  %v2619_v26 = vpop.f32.mrb[15].mxu1 }
 0x225   :  { %2020 = vmatpush3.bf16.msra.mxu0 %v2017_v38  ;;  %1939 = vmatprep.mubr.msk.f32.mxu0 %vm149_vm0, %v2489_v6  ;;  %v1785_v6 = vld [vmem:[%s2665_s6 + $0x3] ss:$0 sm:$0xff] }
 0x226   :  { %2026 = vmatprep.subr.bf16.mxu0 %v2025_v46  ;;  %v1268_v54 = vadd.f32 %v1785_v6, %v1267_v53 }
 0x228   :  { %1940 = vmatmul.mubr.msk.f32.vlgmr.msra.gmra.mrb[6].mxu0 %vm149_vm0, %v2497_v16  ;;  %v1015_v16 = vadd.f32 %v1927_v17, %v1773_v49  ;;  %v1458_v56 = vmul.f32 %v1268_v54, %v1010_v51 }
 0x229   :  { %2028 = vmatpush3.bf16.msra.mxu0 %v2025_v46  ;;  %1953 = vmatprep.mubr.msk.f32.mxu0 %vm149_vm0, %v2501_v21  ;;  %v1777_v21 = vld [vmem:[%s2663_s4 + $0x3] ss:$0 sm:$0xff] }
 0x22a   :  { %v1096_v55 = vadd.f32 %v1777_v21, %v1095_v50  ;;  %v1460_v58 = vsel %vm149_vm0, %v1458_v56, 0.0  ;;  %v1101_v61 = vadd.f32 %v1934_v48, %v1777_v21  ;;  %2034 = vmatprep.subr.bf16.mxu0 %v2033_v29 }
 0x22b   :  { %1461 = vadd.xlane.f32.xlu1 %v1460_v58 }
 0x22c   :  { %1954 = vmatmul.mubr.msk.f32.vlgmr.msra.gmra.mrb[8].mxu0 %vm149_vm0, %v2509_v23  ;;  %v1273_v23 = vadd.f32 %v1948_v52, %v1785_v6  ;;  %v1592_v60 = vmul.f32 %v1268_v54, %v1096_v55 }
 0x22d   :  { %2036 = vmatpush3.bf16.msra.mxu0 %v2033_v29 }
 0x22e   :  { %v1459_v57 = vmul.f32 %v1273_v23, %v1015_v16  ;;  %v1594_v62 = vsel %vm149_vm0, %v1592_v60, 0.0  ;;  %v1593_v63 = vmul.f32 %v1273_v23, %v1101_v61  ;;  %2038 = vmatprep.subr.bf16.mxu0 %v2621_v32 }
 0x230   :  { %v1463_v59 = vsel %vm149_vm0, %v1459_v57, 0.0  ;;  %v1597_v0 = vsel %vm149_vm0, %v1593_v63, 0.0 }
 0x231   :  { %1464 = vadd.xlane.f32.xlu1 %v1463_v59 }
 0x235   :  { %1595 = vadd.xlane.f32.xlu1 %v1594_v62 }
 0x239   :  { %1598 = vadd.xlane.f32.xlu1 %v1597_v0 }
 0x2b8   :  { %v1462_v33 = vpop.xlane.xlu1 %1461 }
 0x2b9   :  { %v1466_v8 = vmul.f32 0.25, %v1462_v33 }
 0x2be   :  { %v1465_v4 = vpop.xlane.xlu1 %1464 }
 0x2bf   :  { %v1467_v9 = vmul.f32 0.25, %v1465_v4 }
 0x2c2   :  { %v1596_v36 = vpop.xlane.xlu1 %1595 }
 0x2c3   :  { %v1600_v44 = vmul.f32 0.25, %v1596_v36 }
 0x2c6   :  { %v1599_v46 = vpop.xlane.xlu1 %1598 }
 0x2fb   :  { %v1941_v2 = vpop.f32.mrb[6].mxu0 }
 0x2fc   :  { %v1181_v3 = vpop.f32.mrb[7].mxu0  ;;  %v1187_v7 = vadd.f32 %v1941_v2, %v1781_v1 }
 0x2fd   :  { %v1182_v5 = vadd.f32 %v1781_v1, %v1181_v3 }
 0x2fe   :  { %v1449_v14 = vmul.f32 %v1187_v7, %v1015_v16  ;;  %v1583_v19 = vmul.f32 %v1187_v7, %v1101_v61  ;;  %v1601_v16 = vmul.f32 0.25, %v1599_v46 }
 0x2ff   :  { %v1448_v11 = vmul.f32 %v1182_v5, %v1010_v51  ;;  %v1582_v13 = vmul.f32 %v1182_v5, %v1096_v55  ;;  %v2613_v22 = vpop.f32.mrb[8].mxu0  ;;  %v1789_v5 = vld [vmem:[%s2667_s8 + $0x2] ss:$0 sm:$0xff] }
 0x300   :  { %v1453_v15 = vsel %vm149_vm0, %v1449_v14, 0.0  ;;  %v1587_v20 = vsel %vm149_vm0, %v1583_v19, 0.0  ;;  %v2617_v25 = vpop.f32.mrb[9].mxu0  ;;  %v1359_v31 = vadd.f32 %v2613_v22, %v1789_v5 }
 0x301   :  { %v1450_v12 = vsel %vm149_vm0, %v1448_v11, 0.0  ;;  %v1584_v18 = vsel %vm149_vm0, %v1582_v13, 0.0  ;;  %v1793_v11 = vld [vmem:[%s2667_s8 + $0x3] ss:$0 sm:$0xff] }
 0x302   :  { %1451 = vadd.xlane.f32.xlu0 %v1450_v12  ;;  %v1440_v13 = vadd.f32 %v1793_v11, %v2619_v26  ;;  %v1445_v4 = vadd.f32 %v2615_v24, %v1793_v11 }
 0x306   :  { %1454 = vadd.xlane.f32.xlu0 %v1453_v15  ;;  %v1354_v15 = vadd.f32 %v1789_v5, %v2617_v25 }
 0x30a   :  { %1585 = vadd.xlane.f32.xlu0 %v1584_v18 }
 0x30e   :  { %1588 = vadd.xlane.f32.xlu0 %v1587_v20 }
 0x38f   :  { %v1452_v34 = vpop.xlane.xlu0 %1451 }
 0x390   :  { %v1456_v35 = vmul.f32 0.25, %v1452_v34 }
 0x392   :  { %v1468_v37 = vmax.f32 %v1456_v35, %v1466_v8 }
 0x393   :  { %v1455_v38 = vpop.xlane.xlu0 %1454 }
 0x394   :  { %v1470_v10 = vsub.f32 %v1456_v35, %v1468_v37  ;;  %v1476_v39 = vsub.f32 %v1466_v8, %v1468_v37  ;;  %v1457_v40 = vmul.f32 0.25, %v1455_v38 }
 0x396   :  { %v1472_v41 = vmul.f32 1.442695, %v1470_v10  ;;  %v1478_v42 = vmul.f32 1.442695, %v1476_v39  ;;  %v1469_v43 = vmax.f32 %v1457_v40, %v1467_v9 }
 0x397   :  { %v1586_v45 = vpop.xlane.xlu0 %1585 }
 0x398   :  { %2081 = vpow2.f32 %v1472_v41  ;;  %v1471_v17 = vsub.f32 %v1457_v40, %v1469_v43  ;;  %v1477_v47 = vsub.f32 %v1467_v9, %v1469_v43  ;;  %v1590_v48 = vmul.f32 0.25, %v1586_v45 }
 0x399   :  { %2083 = vpow2.f32 %v1478_v42 }
 0x39a   :  { %v1474_v49 = vmul.f32 1.442695, %v1471_v17  ;;  %v1480_v50 = vmul.f32 1.442695, %v1477_v47  ;;  %v1602_v6 = vmax.f32 %v1590_v48, %v1600_v44 }
 0x39b   :  { %v1589_v51 = vpop.xlane.xlu0 %1588 }
 0x39c   :  { %2085 = vpow2.f32 %v1474_v49  ;;  %v1604_v52 = vsub.f32 %v1590_v48, %v1602_v6  ;;  %v1610_v21 = vsub.f32 %v1600_v44, %v1602_v6  ;;  %v1591_v23 = vmul.f32 0.25, %v1589_v51  ;;  %v1800_v44 = vld [vmem:[%s2669_s10] ss:$0 sm:$0xff] }
 0x39d   :  { %2087 = vpow2.f32 %v1480_v50 }
 0x39e   :  { %v1606_v53 = vmul.f32 1.442695, %v1604_v52  ;;  %v1612_v54 = vmul.f32 1.442695, %v1610_v21  ;;  %v1603_v55 = vmax.f32 %v1591_v23, %v1601_v16 }
 0x3a0   :  { %2089 = vpow2.f32 %v1606_v53  ;;  %v1605_v56 = vsub.f32 %v1591_v23, %v1603_v55  ;;  %v1611_v57 = vsub.f32 %v1601_v16, %v1603_v55 }
 0x3a1   :  { %2091 = vpow2.f32 %v1612_v54 }
 0x3a2   :  { %v2082_v58 = vpop.eup %2081  ;;  %v1608_v59 = vmul.f32 1.442695, %v1605_v56  ;;  %v1614_v60 = vmul.f32 1.442695, %v1611_v57 }
 0x3a3   :  { %v2084_v61 = vpop.eup %2083 }
 0x3a4   :  { %v1482_v62 = vadd.f32 %v2084_v61, %v2082_v58  ;;  %2093 = vpow2.f32 %v1608_v59 }
 0x3a5   :  { %2095 = vpow2.f32 %v1614_v60 }
 0x3a6   :  { %v2086_v63 = vpop.eup %2085  ;;  %2097 = vrcp.f32 %v1482_v62 }
 0x3a7   :  { %v2088_v0 = vpop.eup %2087 }
 0x3a8   :  { %v1483_v1 = vadd.f32 %v2088_v0, %v2086_v63 }
 0x3aa   :  { %v2090_v2 = vpop.eup %2089  ;;  %2099 = vrcp.f32 %v1483_v1 }
 0x3ab   :  { %v2092_v3 = vpop.eup %2091 }
 0x3ac   :  { %v1616_v7 = vadd.f32 %v2092_v3, %v2090_v2 }
 0x3ae   :  { %v2094_v12 = vpop.eup %2093  ;;  %2101 = vrcp.f32 %v1616_v7 }
 0x3af   :  { %v2096_v14 = vpop.eup %2095 }
 0x3b0   :  { %v2098_v18 = vpop.eup %2097  ;;  %v1617_v19 = vadd.f32 %v2096_v14, %v2094_v12 }
 0x3b1   :  { %v1486_v20 = vmul.f32 %v2098_v18, %v2082_v58  ;;  %v1490_v27 = vmul.f32 %v2098_v18, %v2084_v61 }
 0x3b2   :  { %2103 = vrcp.f32 %v1617_v19 }
 0x3b3   :  { %v1488_v28 = vmul.f32 %v1486_v20, %v1354_v15  ;;  %v1492_v29 = vmul.f32 %v1490_v27, %v1440_v13 }
 0x3b4   :  { %v2100_v30 = vpop.eup %2099 }
 0x3b5   :  { %v1487_v33 = vmul.f32 %v2100_v30, %v2086_v63  ;;  %v1491_v34 = vmul.f32 %v2100_v30, %v2088_v0  ;;  %v1494_v8 = vadd.f32 %v1492_v29, %v1488_v28 }
 0x3b7   :  { %v1489_v35 = vmul.f32 %v1487_v33, %v1359_v31  ;;  %v1493_v36 = vmul.f32 %v1491_v34, %v1445_v4  ;;  %1967 = vmatprep.mubr.msk.f32.mxu0 %vm149_vm0, %v1494_v8 }
 0x3b8   :  { %v2102_v25 = vpop.eup %2101 }
 0x3b9   :  { %v1495_v26 = vadd.f32 %v1493_v36, %v1489_v35  ;;  %v1620_v37 = vmul.f32 %v2102_v25, %v2090_v2  ;;  %v1624_v38 = vmul.f32 %v2102_v25, %v2092_v3 }
 0x3bb   :  { %v1622_v9 = vmul.f32 %v1620_v37, %v1354_v15  ;;  %v1626_v10 = vmul.f32 %v1624_v38, %v1440_v13  ;;  %1968 = vmatmul.mubr.msk.f32.vlgmr.msra.gmra.mrb[4].mxu0 %vm149_vm0, %v1495_v26 }
 0x3bc   :  { %v2104_v39 = vpop.eup %2103  ;;  %2040 = vmatpush3.bf16.msra.mxu0 %v2621_v32 }
 0x3bd   :  { %v1621_v22 = vmul.f32 %v2104_v39, %v2094_v12  ;;  %v1625_v40 = vmul.f32 %v2104_v39, %v2096_v14  ;;  %v1628_v24 = vadd.f32 %v1626_v10, %v1622_v9 }
 0x3bf   :  { %v1623_v41 = vmul.f32 %v1621_v22, %v1359_v31  ;;  %v1627_v42 = vmul.f32 %v1625_v40, %v1445_v4  ;;  %1974 = vmatprep.mubr.msk.f32.mxu0 %vm149_vm0, %v1628_v24 }
 0x3c1   :  { %v1629_v43 = vadd.f32 %v1627_v42, %v1623_v41 }
 0x3c3   :  { %1975 = vmatmul.mubr.msk.f32.vlgmr.msra.gmra.mrb[4].mxu0 %vm149_vm0, %v1629_v43 }
 0x496   :  { %v1976_v45 = vpop.f32.mrb[4].mxu0 }
 0x497   :  { %v1724_v46 = vadd.f32 %v1976_v45, %v1800_v44  ;;  %v1705_v17 = vpop.f32.mrb[5].mxu0 }
 0x498   :  { %v1723_v32 = vadd.f32 %v1800_v44, %v1705_v17 }
 0x499   :  { %1726 = vst.msk [vmem:[#allocation14 + $0x8] sm:$0xff] %vm149_vm0, %v1724_v46 }
 0x49a   :  { %1725 = vst.msk [vmem:[#allocation14] sm:$0xff] %vm149_vm0, %v1723_v32 }
 0x49b   :  { %2270 = shalt.err (!%p2267_p4)
}
 0x49c   :  { %s2271_s18 = scalar_lea.hbm %s2670_s11, 256 }
 0x49d   :  { %p2272_p5 = scmp.ne.s32.totalorder %s2670_s11, %s2271_s18  ;;  %p2275_p6 = scmp.lt.u32.totalorder %s2271_s18, %s2670_s11 }
 0x49f   :  { %p2277_p7 = pnand %p2275_p6, %p2272_p5 }
 0x4a1   :  { %2280 = shalt.err (!%p2277_p7)
}
 0x4a2   :  { %1738 = dma.vmem_to_hbm [thread:$0]  %s1733_s9, 256, %s2670_s11, [#allocation4], %s2293_s29, %s2293_s29, %s2294_s30  }
 0x4a3   :  { %2289 = dma.done.wait [#allocation4], 256  }
 0x4a4   :  { %2290 = vsyncadd [#allocation4], 4294967040 }
 0x4a5   :  { %1742 = vsyncpa [#allocation3], 1 }
 0x4a6   :  { %1743 = vsyncpa [#allocation6], 1 }
 0x4a7   :  { %1744 = vsyncpa [#allocation9], 1 }
 0x4a8   :  { %1745 = vsyncpa [#allocation12], 1 }
 0x4a9   :  { %1746 = vsyncpa [#allocation4], 1 }

</bundles_post_ra>
